<compile_context>
chip_gen: v6e
topology: v6e:2x2x1
jax: 0.10.0
libtpu: 0.0.40
codegen_flags: <defaults>
</compile_context>

<pallas_src>
import jax
import jax.numpy as jnp
from jax.experimental import pallas as pl
from jax.experimental.pallas import tpu as pltpu

LANES = 128  # one vreg row; all intermediates are (1, 128) f32


def _mlp_kernel(x_ref, w_ref, o_ref):
    # x_ref: (2,)  f32 in SMEM  -> the two scalar inputs x1, x2
    # w_ref: (12,) f32 in SMEM  -> [W1 | W2 | W3], each 2x2 row-major
    # o_ref: (2, LANES) f32 in VMEM -> row j holds output feature j (lane-broadcast)
    x0 = jnp.full((1, LANES), x_ref[0], jnp.float32)
    x1 = jnp.full((1, LANES), x_ref[1], jnp.float32)

    # fc1: PyTorch Linear computes y = x @ W.T, i.e. y_j = x0*W[j,0] + x1*W[j,1]
    h0 = x0 * w_ref[0] + x1 * w_ref[1]
    h1 = x0 * w_ref[2] + x1 * w_ref[3]
    h0 = jnp.maximum(h0, 0.0)
    h1 = jnp.maximum(h1, 0.0)

    # fc2 + relu
    g0 = h0 * w_ref[4] + h1 * w_ref[5]
    g1 = h0 * w_ref[6] + h1 * w_ref[7]
    g0 = jnp.maximum(g0, 0.0)
    g1 = jnp.maximum(g1, 0.0)

    # fc3 (no relu)
    y0 = g0 * w_ref[8] + g1 * w_ref[9]
    y1 = g0 * w_ref[10] + g1 * w_ref[11]
    o_ref[...] = jnp.concatenate([y0, y1], axis=0)


def model_forward(x, w_flat):
    out = pl.pallas_call(
        _mlp_kernel,
        out_shape=jax.ShapeDtypeStruct((2, LANES), jnp.float32),
        grid=(),
        in_specs=[
            pl.BlockSpec(memory_space=pltpu.MemorySpace.SMEM),  # x (2,)
            pl.BlockSpec(memory_space=pltpu.MemorySpace.SMEM),  # weights (12,)
        ],
        out_specs=pl.BlockSpec((2, LANES), lambda: (0, 0)),
    )(x, w_flat)
    return out[:, 0]  # (2,), matches the torch module's output


if __name__ == "__main__":
    # Deterministic parameters, identical to the PyTorch module's __init__.
    w1 = jnp.array([[1.0, -2.0], [-1.0, 1.0]], jnp.float32)
    w2 = jnp.array([[2.0, -1.0], [-2.0, -1.0]], jnp.float32)
    w3 = jnp.array([[3.0, -1.0], [-1.0, 4.0]], jnp.float32)
    # Hoisted once (constant): flat [W1 | W2 | W3], row-major 2x2 each.
    w_flat = jnp.concatenate([w1.reshape(-1), w2.reshape(-1), w3.reshape(-1)])

    # Small deterministic inputs (the module's forward takes two scalars x1, x2).
    x = jax.random.normal(jax.random.PRNGKey(0), (2,), jnp.float32)

    fwd = jax.jit(model_forward)
    out = jax.block_until_ready(fwd(x, w_flat))

    # Pure-JAX reference for a sanity check (same math as the torch module).
    def ref(xv):
        h = jnp.maximum(xv @ w1.T, 0.0)
        h = jnp.maximum(h @ w2.T, 0.0)
        return h @ w3.T

    expected = ref(x)
    assert jnp.allclose(out, expected, atol=1e-5), (out, expected)
    print("KERNEL_OK")
</pallas_src>

<mosaic_0001>
module attributes {stable_mosaic.version = 11 : i64} {
  func.func @_mlp_kernel(%arg0: memref<2xf32, #tpu.memory_space<smem>>, %arg1: memref<12xf32, #tpu.memory_space<smem>>, %arg2: memref<2x128xf32, #tpu.memory_space<vmem>>) attributes {dimension_semantics = [], scalar_prefetch = 0 : i64, scratch_operands = 0 : i64, tpu.core_type = #tpu.core_type<tc>} {
    %c0 = arith.constant 0 : index
    %0 = memref.load %arg0[%c0] : memref<2xf32, #tpu.memory_space<smem>>
    %1 = vector.broadcast %0 : f32 to vector<1x128xf32>
    %c1 = arith.constant 1 : index
    %2 = memref.load %arg0[%c1] : memref<2xf32, #tpu.memory_space<smem>>
    %3 = vector.broadcast %2 : f32 to vector<1x128xf32>
    %c0_0 = arith.constant 0 : index
    %4 = memref.load %arg1[%c0_0] : memref<12xf32, #tpu.memory_space<smem>>
    %5 = vector.broadcast %4 : f32 to vector<1x128xf32>
    %6 = arith.mulf %1, %5 : vector<1x128xf32>
    %c1_1 = arith.constant 1 : index
    %7 = memref.load %arg1[%c1_1] : memref<12xf32, #tpu.memory_space<smem>>
    %8 = vector.broadcast %7 : f32 to vector<1x128xf32>
    %9 = arith.mulf %3, %8 : vector<1x128xf32>
    %10 = arith.addf %6, %9 : vector<1x128xf32>
    %c2 = arith.constant 2 : index
    %11 = memref.load %arg1[%c2] : memref<12xf32, #tpu.memory_space<smem>>
    %12 = vector.broadcast %11 : f32 to vector<1x128xf32>
    %13 = arith.mulf %1, %12 : vector<1x128xf32>
    %c3 = arith.constant 3 : index
    %14 = memref.load %arg1[%c3] : memref<12xf32, #tpu.memory_space<smem>>
    %15 = vector.broadcast %14 : f32 to vector<1x128xf32>
    %16 = arith.mulf %3, %15 : vector<1x128xf32>
    %17 = arith.addf %13, %16 : vector<1x128xf32>
    %cst = arith.constant 0.000000e+00 : f32
    %18 = vector.broadcast %cst : f32 to vector<1x128xf32>
    %19 = arith.maximumf %10, %18 : vector<1x128xf32>
    %cst_2 = arith.constant 0.000000e+00 : f32
    %20 = vector.broadcast %cst_2 : f32 to vector<1x128xf32>
    %21 = arith.maximumf %17, %20 : vector<1x128xf32>
    %c4 = arith.constant 4 : index
    %22 = memref.load %arg1[%c4] : memref<12xf32, #tpu.memory_space<smem>>
    %23 = vector.broadcast %22 : f32 to vector<1x128xf32>
    %24 = arith.mulf %19, %23 : vector<1x128xf32>
    %c5 = arith.constant 5 : index
    %25 = memref.load %arg1[%c5] : memref<12xf32, #tpu.memory_space<smem>>
    %26 = vector.broadcast %25 : f32 to vector<1x128xf32>
    %27 = arith.mulf %21, %26 : vector<1x128xf32>
    %28 = arith.addf %24, %27 : vector<1x128xf32>
    %c6 = arith.constant 6 : index
    %29 = memref.load %arg1[%c6] : memref<12xf32, #tpu.memory_space<smem>>
    %30 = vector.broadcast %29 : f32 to vector<1x128xf32>
    %31 = arith.mulf %19, %30 : vector<1x128xf32>
    %c7 = arith.constant 7 : index
    %32 = memref.load %arg1[%c7] : memref<12xf32, #tpu.memory_space<smem>>
    %33 = vector.broadcast %32 : f32 to vector<1x128xf32>
    %34 = arith.mulf %21, %33 : vector<1x128xf32>
    %35 = arith.addf %31, %34 : vector<1x128xf32>
    %cst_3 = arith.constant 0.000000e+00 : f32
    %36 = vector.broadcast %cst_3 : f32 to vector<1x128xf32>
    %37 = arith.maximumf %28, %36 : vector<1x128xf32>
    %cst_4 = arith.constant 0.000000e+00 : f32
    %38 = vector.broadcast %cst_4 : f32 to vector<1x128xf32>
    %39 = arith.maximumf %35, %38 : vector<1x128xf32>
    %c8 = arith.constant 8 : index
    %40 = memref.load %arg1[%c8] : memref<12xf32, #tpu.memory_space<smem>>
    %41 = vector.broadcast %40 : f32 to vector<1x128xf32>
    %42 = arith.mulf %37, %41 : vector<1x128xf32>
    %c9 = arith.constant 9 : index
    %43 = memref.load %arg1[%c9] : memref<12xf32, #tpu.memory_space<smem>>
    %44 = vector.broadcast %43 : f32 to vector<1x128xf32>
    %45 = arith.mulf %39, %44 : vector<1x128xf32>
    %46 = arith.addf %42, %45 : vector<1x128xf32>
    %c10 = arith.constant 10 : index
    %47 = memref.load %arg1[%c10] : memref<12xf32, #tpu.memory_space<smem>>
    %48 = vector.broadcast %47 : f32 to vector<1x128xf32>
    %49 = arith.mulf %37, %48 : vector<1x128xf32>
    %c11 = arith.constant 11 : index
    %50 = memref.load %arg1[%c11] : memref<12xf32, #tpu.memory_space<smem>>
    %51 = vector.broadcast %50 : f32 to vector<1x128xf32>
    %52 = arith.mulf %39, %51 : vector<1x128xf32>
    %53 = arith.addf %49, %52 : vector<1x128xf32>
    %54 = tpu.concatenate %46, %53 in 0 : vector<1x128xf32>, vector<1x128xf32> -> vector<2x128xf32>
    %c0_5 = arith.constant 0 : index
    %c0_6 = arith.constant 0 : index
    %55 = vector.load %arg2[%c0_5, %c0_6] : memref<2x128xf32, #tpu.memory_space<vmem>>, vector<2x128xf32>
    tpu.vector_store %arg2[%c0_5, %c0_6], %54 {strides = array<i32>} : memref<2x128xf32, #tpu.memory_space<vmem>>, vector<2x128xf32>,
    return
  }
}

</mosaic_0001>

<bundles_post_ra>
// kernel: model_forward.1
= control target key start
LH: loop header
LB: loop body
LE: loop exit
PB: predicated region body
PF: predicated region fallthrough
CT: control target
= control target key end

     0   :  { %7 = vsyncpa [#allocation3], 0  ;;  %s157_s0 = inlined_call_operand.hbm [shape: f32[2], index: 0, kind: input, shape index: {}]   ;;  %s158_s1 = inlined_call_operand.vmem [shape: f32[12], index: 1, kind: input, shape index: {}]   ;;  %s159_s2 = inlined_call_operand.vmem [shape: f32[2,128], index: 2, kind: output, shape index: {}]  }
   0x1   :  { %8 = vsyncpa [#allocation4], 0  ;;  %s23_s11 = sshll.u32 %s158_s1, 4  ;;  %s131_s12 = smov [#allocation2]   ;;  %s24_s11 = int_to_ptr.vmem [resolvable:$true] %s23_s11 }
   0x2   :  { %16 = dma.hbm_to_smem %s157_s0, 16, %s131_s12, [#allocation3]  }
   0x3   :  { %s115_s15 = scalar_lea.vmem %s24_s11, 16  ;;  %p120_p1 = scmp.lt.s32.totalorder %s24_s11, %s24_s11 }
   0x4   :  { %p116_p0 = scmp.ne.s32.totalorder %s24_s11, %s115_s15  ;;  %p121_p2 = scmp.lt.s32.totalorder %s115_s15, %s115_s15 }
   0x6   :  { %p122_p3 = por %p121_p2, %p120_p1 }
   0x8   :  { %p123_p4 = pnand %p122_p3, %p116_p0 }
   0xa   :  { %126 = shalt.err (!%p123_p4)
}
   0xb   :  { %s132_s16 = smov [#allocation5]  }
   0xc   :  { %26 = dma.vmem_to_smem %s24_s11, 16, %s132_s16, [#allocation4]  }
   0xd   :  { %127 = dma.done.wait [#allocation3], 16  }
   0xe   :  { %128 = vsyncadd [#allocation3], 4294967280 }
   0xf   :  { %129 = dma.done.wait [#allocation4], 16  }
  0x10   :  { %130 = vsyncadd [#allocation4], 4294967280 }
  0x11   :  { %33 = sfence }
  0x12   :  { %s34_s1 = sld [smem:[#allocation2]]  ;;  %vm84_vm0 = vcmask 1040384  }
  0x13   :  { %s93_s17 = sld [smem:[#allocation2 + $0x1]] }
  0x14   :  { %s38_s18 = sld [smem:[#allocation5]] }
  0x15   :  { %s94_s19 = sld [smem:[#allocation5 + $0x1]] }
  0x16   :  { %s95_s0 = sld [smem:[#allocation5 + $0x2]] }
  0x17   :  { %s96_s20 = sld [smem:[#allocation5 + $0x3]] }
  0x18   :  { %v35_v0 = vstv %s34_s1  ;;  %s97_s21 = sld [smem:[#allocation5 + $0x4]] }
  0x19   :  { %v37_v1 = vstv %s93_s17  ;;  %s98_s22 = sld [smem:[#allocation5 + $0x5]] }
  0x1a   :  { %v39_v2 = vstv %s38_s18  ;;  %s99_s23 = sld [smem:[#allocation5 + $0x6]] }
  0x1b   :  { %v40_v3 = vmul.f32 %v39_v2, %v35_v0  ;;  %v42_v4 = vstv %s94_s19  ;;  %s100_s24 = sld [smem:[#allocation5 + $0x7]] }
  0x1c   :  { %v43_v5 = vmul.f32 %v42_v4, %v37_v1  ;;  %v46_v6 = vstv %s95_s0  ;;  %s101_s25 = sld [smem:[#allocation5 + $0x8]] }
  0x1d   :  { %v47_v7 = vmul.f32 %v46_v6, %v35_v0  ;;  %v49_v8 = vstv %s96_s20  ;;  %s102_s26 = sld [smem:[#allocation5 + $0x9]] }
  0x1e   :  { %v44_v9 = vadd.f32 %v43_v5, %v40_v3  ;;  %v50_v10 = vmul.f32 %v49_v8, %v37_v1  ;;  %s103_s27 = sld [smem:[#allocation5 + $0xa]]  ;;  %v55_v11 = vstv %s97_s21 }
  0x1f   :  { %s104_s28 = sld [smem:[#allocation5 + $0xb]]  ;;  %v58_v15 = vstv %s98_s22 }
  0x20   :  { %v51_v12 = vadd.f32 %v50_v10, %v47_v7  ;;  %v52_v13 = vmax.f32 %v44_v9, 0.0  ;;  %v62_v14 = vstv %s99_s23 }
  0x21   :  { %v65_v16 = vstv %s100_s24 }
  0x22   :  { %v53_v17 = vmax.f32 %v51_v12, 0.0  ;;  %v56_v18 = vmul.f32 %v55_v11, %v52_v13  ;;  %v63_v19 = vmul.f32 %v62_v14, %v52_v13  ;;  %v71_v24 = vstv %s101_s25 }
  0x23   :  { %v74_v25 = vstv %s102_s26 }
  0x24   :  { %v59_v20 = vmul.f32 %v58_v15, %v53_v17  ;;  %v66_v21 = vmul.f32 %v65_v16, %v53_v17  ;;  %v78_v26 = vstv %s103_s27 }
  0x25   :  { %v81_v27 = vstv %s104_s28 }
  0x26   :  { %v60_v22 = vadd.f32 %v59_v20, %v56_v18  ;;  %v67_v23 = vadd.f32 %v66_v21, %v63_v19 }
  0x28   :  { %v68_v28 = vmax.f32 %v60_v22, 0.0  ;;  %v69_v29 = vmax.f32 %v67_v23, 0.0 }
  0x2a   :  { %v72_v30 = vmul.f32 %v71_v24, %v68_v28  ;;  %v75_v31 = vmul.f32 %v74_v25, %v69_v29  ;;  %v79_v32 = vmul.f32 %v78_v26, %v68_v28  ;;  %v82_v33 = vmul.f32 %v81_v27, %v69_v29 }
  0x2c   :  { %v76_v34 = vadd.f32 %v75_v31, %v72_v30  ;;  %v83_v35 = vadd.f32 %v82_v33, %v79_v32 }
  0x2e   :  { %v85_v36 = vsel %vm84_vm0, %v76_v34, %v83_v35 }
  0x2f   :  { %86 = vst [vmem:[%s159_s2] sm:$0x3] %v85_v36 }
  0x30   :  { %91 = vsyncpa [#allocation3], 1 }
  0x31   :  { %92 = vsyncpa [#allocation4], 1 }

</bundles_post_ra>
